<compile_context>
chip_gen: v5e
topology: v5e:2x2
jax: 0.10.0
libtpu: 0.0.40
codegen_flags: <defaults>
</compile_context>

<pallas_src>
import jax
import jax.numpy as jnp
from jax.experimental import pallas as pl
from jax.experimental.pallas import tpu as pltpu


def _round_up(x, m):
    return ((x + m - 1) // m) * m


# ----------------------------------------------------------------------------
# Path 1: resident augmented tables, one-hot gather as MXU matmul (small vocab).
# ----------------------------------------------------------------------------
def _glove_onehot_kernel(idx_ref, wc_ref, wx_ref, out_ref):
    # idx_ref : (2, bm) int32       row 0 = center ids, row 1 = context ids (batch on lanes)
    # wc_ref  : (E_pad, V)          transposed augmented center table (resident, 1-buffered)
    # wx_ref  : (E_pad, V)          transposed augmented context table
    # out_ref : (1, bm) float32     lane-dense output tile (full-width unmasked stores)
    center = idx_ref[0:1, :]                                   # (1, bm)
    context = idx_ref[1:2, :]                                  # (1, bm)

    V = wc_ref.shape[1]
    bm = out_ref.shape[1]
    sel_dtype = wc_ref.dtype

    # One-hot selection matrices: vocab on sublanes, batch on lanes.
    row_ids = jax.lax.broadcasted_iota(jnp.int32, (V, bm), 0)  # (V, bm)
    onehot_c = (row_ids == center).astype(sel_dtype)
    onehot_x = (row_ids == context).astype(sel_dtype)

    # Embedding gather as MXU matmul: (E_pad, V) @ (V, bm) -> (E_pad, bm).
    emb_c = jnp.dot(wc_ref[...], onehot_c, preferred_element_type=jnp.float32)
    emb_x = jnp.dot(wx_ref[...], onehot_x, preferred_element_type=jnp.float32)

    # Augmented row-wise dot = dot(w_c, w_x) + b_center[c] + b_contex[x];
    # zero pad rows contribute nothing. Sublane reduce -> lane-dense (1, bm).
    out_ref[...] = jnp.sum(emb_c * emb_x, axis=0, keepdims=True)


# ----------------------------------------------------------------------------
# Path 2: tables stay in HBM, per-pair row gather via data-dependent index_maps.
# ----------------------------------------------------------------------------
def _glove_gather_kernel(ids_ref, wc_row_ref, wx_row_ref, out_ref):
    # ids_ref    : (2*B_pad,) int32 in SMEM (scalar prefetch; only used by index_maps)
    # wc_row_ref : (1, E_pad)       the gathered center row for this (i, j) step
    # wx_row_ref : (1, E_pad)       the gathered context row
    # out_ref    : (1, bm)          resident across the inner grid axis j
    del ids_ref
    j = pl.program_id(1)
    bm = out_ref.shape[1]

    @pl.when(j == 0)
    def _():
        out_ref[...] = jnp.zeros_like(out_ref)

    val = jnp.sum(wc_row_ref[...].astype(jnp.float32) *
                  wx_row_ref[...].astype(jnp.float32))          # scalar
    lane = jax.lax.broadcasted_iota(jnp.int32, (1, bm), 1)
    out_ref[...] = jnp.where(lane == j, val, out_ref[...])      # scatter into lane j


# ----------------------------------------------------------------------------
# Wrapper
# ----------------------------------------------------------------------------
def glove_forward(indices, w_center, w_contex, b_center, b_contex, *,
                  bm=None, use_bf16=False, prefer_gather=None):
    """indices: (B, 2) int; tables: (V, E); biases: (V,). Returns (B,) float32."""
    B = indices.shape[0]
    V, E = w_center.shape
    E_aug = E + 2
    E_pad = _round_up(E_aug, 8)          # align the augmented embedding axis to 8 sublanes

    table_dtype = jnp.bfloat16 if use_bf16 else jnp.float32

    # Fold biases into the tables + zero-pad (wrapper-side layout plumbing only).
    ones = jnp.ones((V, 1), jnp.float32)
    zpad = jnp.zeros((V, E_pad - E_aug), jnp.float32)
    wc_aug = jnp.concatenate(
        [w_center.astype(jnp.float32), b_center.reshape(V, 1).astype(jnp.float32),
         ones, zpad], axis=1).astype(table_dtype)               # (V, E_pad)
    wx_aug = jnp.concatenate(
        [w_contex.astype(jnp.float32), ones,
         b_contex.reshape(V, 1).astype(jnp.float32), zpad], axis=1).astype(table_dtype)

    # Choose path: resident tables are duplicated per TensorCore on v7x (2 TCs, 64 MiB
    # VMEM each) and the one-hot matmul burns O(V) MXU work, so flip to the HBM
    # row-gather path well before the scoped-VMEM limit.
    table_bytes = 2 * V * E_pad * jnp.dtype(table_dtype).itemsize
    if prefer_gather is None:
        prefer_gather = table_bytes > 8 * 1024 * 1024

    # Batch tile: multiple of 128 lanes, default fat enough to amortize per-step
    # overhead and fill the 256-wide MXU, but never bigger than the (padded) batch.
    if bm is None:
        bm = min(2048, _round_up(max(B, 1), 128))
    bm = _round_up(bm, 128)
    B_pad = _round_up(B, bm)

    idx = indices.astype(jnp.int32)
    if B_pad != B:
        idx = jnp.pad(idx, ((0, B_pad - B), (0, 0)))   # pad ids = 0 (valid row), discarded
    idx_t = idx.T                                       # (2, B_pad), batch on the lane axis

    if not prefer_gather:
        wc_t = wc_aug.T                                 # (E_pad, V)
        wx_t = wx_aug.T
        out = pl.pallas_call(
            _glove_onehot_kernel,
            out_shape=jax.ShapeDtypeStruct((1, B_pad), jnp.float32),
            grid_spec=pltpu.PrefetchScalarGridSpec(
                num_scalar_prefetch=0,
                grid=(B_pad // bm,),
                in_specs=[
                    pl.BlockSpec((2, bm), lambda i: (0, i)),      # id slab tile
                    # Constant index_map -> single-buffer the resident tables
                    # (double-buffering them would just double the VMEM footprint).
                    pl.BlockSpec((E_pad, V), lambda i: (0, 0),
                                 pipeline_mode=pl.Buffered(1)),
                    pl.BlockSpec((E_pad, V), lambda i: (0, 0),
                                 pipeline_mode=pl.Buffered(1)),
                ],
                out_specs=pl.BlockSpec((1, bm), lambda i: (0, i)),  # lane-dense output
            ),
            # No vmem_limit_bytes override: default scoped limit is plenty here, and
            # hard-coding 64 MiB would be the entire physical per-core VMEM on v7x.
            compiler_params=pltpu.CompilerParams(
                dimension_semantics=("parallel",),
            ),
        )(idx_t, wc_t, wx_t)
        return out[0, :B]

    # ---- large-vocab HBM row-gather path ----
    ids_flat = idx_t.reshape(-1)          # (2*B_pad,), 1-D => SMEM-friendly padding
    n_tiles = B_pad // bm

    def wc_map(i, j, ids):                # block size 1 along rows => block idx == row id
        return (ids[i * bm + j], 0)

    def wx_map(i, j, ids):
        return (ids[B_pad + i * bm + j], 0)

    out = pl.pallas_call(
        _glove_gather_kernel,
        out_shape=jax.ShapeDtypeStruct((1, B_pad), jnp.float32),
        grid_spec=pltpu.PrefetchScalarGridSpec(
            num_scalar_prefetch=1,            # ids_flat -> SMEM, fed to the index_maps
            grid=(n_tiles, bm),
            in_specs=[
                pl.BlockSpec((1, E_pad), wc_map),   # one augmented center row per step
                pl.BlockSpec((1, E_pad), wx_map),   # one augmented context row per step
            ],
            out_specs=pl.BlockSpec((1, bm), lambda i, j, ids: (0, i)),
        ),
        compiler_params=pltpu.CompilerParams(
            dimension_semantics=("parallel", "arbitrary"),
        ),
    )(ids_flat, wc_aug, wx_aug)
    return out[0, :B]


if __name__ == "__main__":
    num_words = 64
    embed_size = 32
    batch = 16

    key = jax.random.PRNGKey(0)
    k_wc, k_wx, k_bc, k_bx, k_idx, k_idx2 = jax.random.split(key, 6)

    # nn.Embedding default init: N(0, 1). Biases are zero-init in the module but are
    # learnable; use small random values to exercise the bias path.
    w_center = jax.random.normal(k_wc, (num_words, embed_size), dtype=jnp.float32)
    w_contex = jax.random.normal(k_wx, (num_words, embed_size), dtype=jnp.float32)
    b_center = 0.1 * jax.random.normal(k_bc, (num_words,), dtype=jnp.float32)
    b_contex = 0.1 * jax.random.normal(k_bx, (num_words,), dtype=jnp.float32)

    indices = jax.random.randint(k_idx, (batch, 2), 0, num_words, dtype=jnp.int32)

    def reference(idx):
        emb_c = w_center[idx[:, 0]]
        emb_x = w_contex[idx[:, 1]]
        return (jnp.einsum("bi,bi->b", emb_c, emb_x)
                + b_center[idx[:, 0]] + b_contex[idx[:, 1]])

    # 1) Default resident-table one-hot-matmul path.
    out = jax.block_until_ready(
        glove_forward(indices, w_center, w_contex, b_center, b_contex))
    assert out.shape == (batch,)
    assert jnp.allclose(out, reference(indices), atol=1e-5, rtol=1e-5)

    # 2) Large-vocab HBM row-gather path (forced at small shapes to exercise it).
    out_g = jax.block_until_ready(
        glove_forward(indices, w_center, w_contex, b_center, b_contex,
                      prefer_gather=True))
    assert jnp.allclose(out_g, reference(indices), atol=1e-5, rtol=1e-5)

    # 3) Non-multiple-of-128 batch: exercises lane padding + the fatter default tile.
    idx3 = jax.random.randint(k_idx2, (300, 2), 0, num_words, dtype=jnp.int32)
    out3 = jax.block_until_ready(
        glove_forward(idx3, w_center, w_contex, b_center, b_contex))
    assert out3.shape == (300,)
    assert jnp.allclose(out3, reference(idx3), atol=1e-5, rtol=1e-5)

    print("KERNEL_OK")
</pallas_src>

<mosaic_0001>
module attributes {stable_mosaic.version = 11 : i64} {
  func.func @_glove_onehot_kernel(%arg0: i32, %arg1: memref<2x128xi32, #tpu.memory_space<vmem>>, %arg2: memref<40x64xf32, #tpu.memory_space<vmem>>, %arg3: memref<40x64xf32, #tpu.memory_space<vmem>>, %arg4: memref<1x128xf32, #tpu.memory_space<vmem>>) attributes {dimension_semantics = [#tpu.dimension_semantics<parallel>], iteration_bounds = array<i64: 1>, scalar_prefetch = 0 : i64, scratch_operands = 0 : i64, tpu.core_type = #tpu.core_type<tc>, window_params = [{transform_indices = @transform_0, window_bounds = array<i64: 2, 128>}, {pipeline_mode = #tpu.pipeline_mode<synchronous>, transform_indices = @transform_1, window_bounds = array<i64: 40, 64>}, {pipeline_mode = #tpu.pipeline_mode<synchronous>, transform_indices = @transform_2, window_bounds = array<i64: 40, 64>}, {transform_indices = @transform_3, window_bounds = array<i64: 1, 128>}]} {
    %c0 = arith.constant 0 : index
    %c0_0 = arith.constant 0 : index
    %0 = vector.load %arg1[%c0, %c0_0] : memref<2x128xi32, #tpu.memory_space<vmem>>, vector<1x128xi32>
    %c1 = arith.constant 1 : index
    %c0_1 = arith.constant 0 : index
    %1 = vector.load %arg1[%c1, %c0_1] : memref<2x128xi32, #tpu.memory_space<vmem>>, vector<1x128xi32>
    %2 = tpu.iota {dimensions = array<i32: 0>} : vector<64x128xi32>
    %3 = vector.broadcast %0 : vector<1x128xi32> to vector<64x128xi32>
    %4 = arith.cmpi eq, %2, %3 : vector<64x128xi32>
    %5 = arith.extui %4 : vector<64x128xi1> to vector<64x128xi32>
    %6 = arith.sitofp %5 : vector<64x128xi32> to vector<64x128xf32>
    %7 = vector.broadcast %1 : vector<1x128xi32> to vector<64x128xi32>
    %8 = arith.cmpi eq, %2, %7 : vector<64x128xi32>
    %9 = arith.extui %8 : vector<64x128xi1> to vector<64x128xi32>
    %10 = arith.sitofp %9 : vector<64x128xi32> to vector<64x128xf32>
    %c0_2 = arith.constant 0 : index
    %c0_3 = arith.constant 0 : index
    %11 = vector.load %arg2[%c0_2, %c0_3] : memref<40x64xf32, #tpu.memory_space<vmem>>, vector<40x64xf32>
    %cst = arith.constant dense<0.000000e+00> : vector<40x128xf32>
    %12 = tpu.matmul %11, %6, %cst {dimension_numbers = #tpu.dot_dimension_numbers<[1], [0], [0], [1], [0, 0, 1, 1], [], []>} : vector<40x64xf32>, vector<64x128xf32>, vector<40x128xf32> -> vector<40x128xf32>
    %c0_4 = arith.constant 0 : index
    %c0_5 = arith.constant 0 : index
    %13 = vector.load %arg3[%c0_4, %c0_5] : memref<40x64xf32, #tpu.memory_space<vmem>>, vector<40x64xf32>
    %cst_6 = arith.constant dense<0.000000e+00> : vector<40x128xf32>
    %14 = tpu.matmul %13, %10, %cst_6 {dimension_numbers = #tpu.dot_dimension_numbers<[1], [0], [0], [1], [0, 0, 1, 1], [], []>} : vector<40x64xf32>, vector<64x128xf32>, vector<40x128xf32> -> vector<40x128xf32>
    %15 = arith.mulf %12, %14 : vector<40x128xf32>
    %cst_7 = arith.constant dense<0.000000e+00> : vector<128xf32>
    %16 = vector.multi_reduction <add>, %15, %cst_7 [0] : vector<40x128xf32> to vector<128xf32>
    %17 = vector.shape_cast %16 : vector<128xf32> to vector<1x128xf32>
    %c0_8 = arith.constant 0 : index
    %c0_9 = arith.constant 0 : index
    %18 = vector.load %arg4[%c0_8, %c0_9] : memref<1x128xf32, #tpu.memory_space<vmem>>, vector<1x128xf32>
    tpu.vector_store %arg4[%c0_8, %c0_9], %17 {strides = array<i32>} : memref<1x128xf32, #tpu.memory_space<vmem>>, vector<1x128xf32>,
    return
  }
  func.func @transform_0(%arg0: i32) -> (i32, i32) {
    %c0_i32 = arith.constant 0 : i32
    %c0_i32_0 = arith.constant 0 : i32
    return %c0_i32, %arg0 : i32, i32
  }
  func.func @transform_1(%arg0: i32) -> (i32, i32) {
    %c0_i32 = arith.constant 0 : i32
    %c0_i32_0 = arith.constant 0 : i32
    %c0_i32_1 = arith.constant 0 : i32
    return %c0_i32, %c0_i32_0 : i32, i32
  }
  func.func @transform_2(%arg0: i32) -> (i32, i32) {
    %c0_i32 = arith.constant 0 : i32
    %c0_i32_0 = arith.constant 0 : i32
    %c0_i32_1 = arith.constant 0 : i32
    return %c0_i32, %c0_i32_0 : i32, i32
  }
  func.func @transform_3(%arg0: i32) -> (i32, i32) {
    %c0_i32 = arith.constant 0 : i32
    %c0_i32_0 = arith.constant 0 : i32
    return %c0_i32, %arg0 : i32, i32
  }
}

</mosaic_0001>

<bundles_post_ra>
// kernel: tpu_custom_call.1
= control target key start
LH: loop header
LB: loop body
LE: loop exit
PB: predicated region body
PF: predicated region fallthrough
CT: control target
= control target key end

     0   :  { %8 = vsyncpa [#allocation3], 0  ;;  %s489_s0 = inlined_call_operand.hbm [shape: s32[2,128], index: 0, kind: input, shape index: {}]   ;;  %s490_s1 = inlined_call_operand.hbm [shape: f32[40,64], index: 1, kind: input, shape index: {}]   ;;  %s491_s2 = inlined_call_operand.hbm [shape: f32[40,64], index: 2, kind: input, shape index: {}]   ;;  %s492_s3 = inlined_call_operand.hbm [shape: f32[1,128], index: 3, kind: output, shape index: {}]  }
   0x1   :  { %9 = vsyncpa [#allocation6], 0  ;;  %s26_s14 = sshll.u32 %s490_s1, 4  ;;  %s27_s14 = int_to_ptr.hbm [resolvable:$true] %s26_s14 }
   0x2   :  { %10 = vsyncpa [#allocation4], 0  ;;  %s429_s15 = smov [#allocation5]   ;;  %s16_s19 = sshll.u32 %s489_s0, 4  ;;  %s17_s19 = int_to_ptr.hbm [resolvable:$true] %s16_s19 }
   0x3   :  { %s28_s16 = sshll.u32 %s429_s15, 4  ;;  %s430_s20 = smov 128   ;;  %s29_s16 = int_to_ptr.vmem [resolvable:$true] %s28_s16 }
   0x4   :  { %s431_s21 = smov 8   ;;  %s432_s22 = smov [#allocation2]  }
   0x5   :  { %34 = dma.hbm_to_vmem [thread:$0]  %s27_s14, 640, %s29_s16, [#allocation6], %s430_s20, %s430_s20, %s431_s21  }
   0x6   :  { %s18_s23 = sshll.u32 %s432_s22, 4  ;;  %s39_s26 = sshll.u32 %s491_s2, 4  ;;  %s19_s23 = int_to_ptr.vmem [resolvable:$true] %s18_s23  ;;  %s40_s26 = int_to_ptr.hbm [resolvable:$true] %s39_s26 }
   0x7   :  { %21 = dma.hbm_to_vmem [thread:$0]  %s17_s19, 32, %s19_s23, [#allocation3]  }
   0x8   :  { %s433_s1 = smov [#allocation7]  }
   0x9   :  { %s41_s27 = sshll.u32 %s433_s1, 4  ;;  %s42_s27 = int_to_ptr.vmem [resolvable:$true] %s41_s27 }
   0xa   :  { %47 = dma.hbm_to_vmem [thread:$0]  %s40_s26, 640, %s42_s27, [#allocation6], %s430_s20, %s430_s20, %s431_s21  }
   0xb   :  { %423 = dma.done.wait [#allocation3], 32  }
   0xc   :  { %424 = vsyncadd [#allocation3], 4294967264 }
   0xd   :  { %425 = dma.done.wait [#allocation6], 1280  }
   0xe   :  { %426 = vsyncadd [#allocation6], 4294966016  ;;  %v62_v0 = vlaneseq  ;;  %v325_v5 = vld [vmem:[#allocation2] ss:$0 sm:$0xff]  ;;  %v326_v6 = vld [vmem:[#allocation2 + $0x1] ss:$0 sm:$0xff] }
   0xf   :  { %v434_v8 = vmov 1.0   ;;  %v121_v12 = vld [vmem:[#allocation5] sm:$0xff]  ;;  %v123_v13 = vld [vmem:[#allocation5 + $0x10] sm:$0xff]  ;;  %v174_v14 = vld [vmem:[#allocation7] sm:$0xff]  ;;  %s435_s0 = smov [#allocation8]   ;;  %s249_s30 = sshll.u32 %s492_s3, 4  ;;  %s250_s30 = int_to_ptr.hbm [resolvable:$true] %s249_s30 }
  0x10   :  { %v465_v1 = vshrl.u32 %v62_v0, 7  ;;  %v177_v15 = vld [vmem:[#allocation7 + $0x18] sm:$0xff]  ;;  %v122_v16 = vld [vmem:[#allocation5 + $0x8] sm:$0xff]  ;;  %v124_v17 = vld [vmem:[#allocation5 + $0x18] sm:$0xff]  ;;  %s247_s2 = sshll.u32 %s435_s0, 4  ;;  %s248_s2 = int_to_ptr.vmem [resolvable:$true] %s247_s2 }
  0x11   :  { %v175_v18 = vld [vmem:[#allocation7 + $0x8] sm:$0xff]  ;;  %v178_v19 = vld [vmem:[#allocation7 + $0x20] sm:$0xff]  ;;  %v125_v20 = vld [vmem:[#allocation5 + $0x20] sm:$0xff] }
  0x12   :  { %v70_v2 = vadd.s32 56, %v465_v1  ;;  %v69_v3 = vadd.s32 48, %v465_v1  ;;  %v68_v4 = vadd.s32 40, %v465_v1  ;;  %v67_v7 = vadd.s32 32, %v465_v1  ;;  %v176_v21 = vld [vmem:[#allocation7 + $0x10] sm:$0xff] }
  0x13   :  { %v66_v9 = vadd.s32 24, %v465_v1  ;;  %v65_v10 = vadd.s32 16, %v465_v1  ;;  %v64_v11 = vadd.s32 8, %v465_v1  ;;  %vm72_vm14 = vcmp.eq.s32.totalorder %v465_v1, %v325_v5 }
  0x14   :  { %vm79_vm0 = vcmp.eq.s32.totalorder %v70_v2, %v325_v5  ;;  %vm78_vm1 = vcmp.eq.s32.totalorder %v69_v3, %v325_v5  ;;  %vm104_vm2 = vcmp.eq.s32.totalorder %v70_v2, %v326_v6  ;;  %vm103_vm3 = vcmp.eq.s32.totalorder %v69_v3, %v326_v6 }
  0x15   :  { %276 = vmatpush.msk.msra.mxu0 %vm79_vm0, %v434_v8  ;;  %302 = vmatpush.msk.msra.mxu2 %vm79_vm0, %v434_v8  ;;  %vm77_vm4 = vcmp.eq.s32.totalorder %v68_v4, %v325_v5  ;;  %vm102_vm5 = vcmp.eq.s32.totalorder %v68_v4, %v326_v6  ;;  %vm76_vm6 = vcmp.eq.s32.totalorder %v67_v7, %v325_v5  ;;  %vm126_vm0 = vcmask 523264  }
  0x16   :  { %289 = vmatpush.msk.msra.mxu1 %vm104_vm2, %v434_v8  ;;  %310 = vmatpush.msk.msra.mxu3 %vm104_vm2, %v434_v8  ;;  %vm101_vm7 = vcmp.eq.s32.totalorder %v67_v7, %v326_v6  ;;  %vm75_vm8 = vcmp.eq.s32.totalorder %v66_v9, %v325_v5  ;;  %vm100_vm9 = vcmp.eq.s32.totalorder %v66_v9, %v326_v6 }
  0x17   :  { %277 = vmatpush.msk.msra.mxu0 %vm78_vm1, %v434_v8  ;;  %303 = vmatpush.msk.msra.mxu2 %vm78_vm1, %v434_v8  ;;  %vm74_vm10 = vcmp.eq.s32.totalorder %v65_v10, %v325_v5  ;;  %vm99_vm11 = vcmp.eq.s32.totalorder %v65_v10, %v326_v6  ;;  %vm73_vm12 = vcmp.eq.s32.totalorder %v64_v11, %v325_v5 }
  0x18   :  { %290 = vmatpush.msk.msra.mxu1 %vm103_vm3, %v434_v8  ;;  %311 = vmatpush.msk.msra.mxu3 %vm103_vm3, %v434_v8  ;;  %vm98_vm13 = vcmp.eq.s32.totalorder %v64_v11, %v326_v6  ;;  %vm97_vm15 = vcmp.eq.s32.totalorder %v465_v1, %v326_v6 }
  0x19   :  { %278 = vmatpush.msk.msra.mxu0 %vm77_vm4, %v434_v8  ;;  %304 = vmatpush.msk.msra.mxu2 %vm77_vm4, %v434_v8 }
  0x1a   :  { %291 = vmatpush.msk.msra.mxu1 %vm102_vm5, %v434_v8  ;;  %312 = vmatpush.msk.msra.mxu3 %vm102_vm5, %v434_v8 }
  0x1b   :  { %279 = vmatpush.msk.msra.mxu0 %vm76_vm6, %v434_v8  ;;  %305 = vmatpush.msk.msra.mxu2 %vm76_vm6, %v434_v8 }
  0x1c   :  { %292 = vmatpush.msk.msra.mxu1 %vm101_vm7, %v434_v8  ;;  %313 = vmatpush.msk.msra.mxu3 %vm101_vm7, %v434_v8 }
  0x1d   :  { %280 = vmatpush.msk.msra.mxu0 %vm75_vm8, %v434_v8  ;;  %306 = vmatpush.msk.msra.mxu2 %vm75_vm8, %v434_v8 }
  0x1e   :  { %293 = vmatpush.msk.msra.mxu1 %vm100_vm9, %v434_v8  ;;  %314 = vmatpush.msk.msra.mxu3 %vm100_vm9, %v434_v8 }
  0x1f   :  { %281 = vmatpush.msk.msra.mxu0 %vm74_vm10, %v434_v8  ;;  %307 = vmatpush.msk.msra.mxu2 %vm74_vm10, %v434_v8 }
  0x20   :  { %294 = vmatpush.msk.msra.mxu1 %vm99_vm11, %v434_v8  ;;  %315 = vmatpush.msk.msra.mxu3 %vm99_vm11, %v434_v8 }
  0x21   :  { %282 = vmatpush.msk.msra.mxu0 %vm73_vm12, %v434_v8  ;;  %308 = vmatpush.msk.msra.mxu2 %vm73_vm12, %v434_v8 }
  0x22   :  { %295 = vmatpush.msk.msra.mxu1 %vm98_vm13, %v434_v8  ;;  %316 = vmatpush.msk.msra.mxu3 %vm98_vm13, %v434_v8 }
  0x23   :  { %283 = vmatpush.msk.msra.mxu0 %vm72_vm14, %v434_v8  ;;  %309 = vmatpush.msk.msra.mxu2 %vm72_vm14, %v434_v8 }
  0x24   :  { %296 = vmatpush.msk.msra.mxu1 %vm97_vm15, %v434_v8  ;;  %284 = vmatmul.msk.f32.vlgmr.msra.gmra.mxu0 %vm126_vm0, %v121_v12 }
  0x25   :  { %286 = vmatmul.msk.f32.vlgmr.msra.gmra.mxu2 %vm126_vm0, %v123_v13  ;;  %297 = vmatmul.msk.f32.vlgmr.msra.gmra.mxu1 %vm126_vm0, %v174_v14 }
  0x26   :  { %317 = vmatpush.msk.msra.mxu3 %vm97_vm15, %v434_v8 }
  0x27   :  { %300 = vmatmul.msk.f32.vlgmr.msra.gmra.mxu3 %vm126_vm0, %v177_v15 }
  0x2c   :  { %285 = vmatmul.msk.f32.gmra.mxu0 %vm126_vm0, %v122_v16 }
  0x2d   :  { %287 = vmatmul.msk.f32.gmra.mxu2 %vm126_vm0, %v124_v17  ;;  %298 = vmatmul.msk.f32.gmra.mxu1 %vm126_vm0, %v175_v18 }
  0x2f   :  { %301 = vmatmul.msk.f32.gmra.mxu3 %vm126_vm0, %v178_v19 }
  0x35   :  { %288 = vmatmul.msk.f32.gmra.mxu2 %vm126_vm0, %v125_v20  ;;  %299 = vmatmul.msk.f32.gmra.mxu1 %vm126_vm0, %v176_v21 }
  0xa1   :  { %v159_v22 = vpop.f32.mrf.mxu0 }
  0xa2   :  { %v211_v23 = vpop.f32.mrf.mxu1 }
  0xa3   :  { %v226_v30 = vmul.f32 %v211_v23, %v159_v22 }
  0xa8   :  { %v165_v24 = vpop.f32.mrf.mxu2 }
  0xa9   :  { %v162_v26 = vpop.f32.mrf.mxu0 }
  0xaa   :  { %v214_v25 = vpop.f32.mrf.mxu1  ;;  %v220_v27 = vpop.f32.mrf.mxu3 }
  0xab   :  { %v227_v28 = vmul.f32 %v214_v25, %v162_v26 }
  0xad   :  { %v231_v32 = vadd.f32 %v227_v28, %v226_v30 }
  0xb0   :  { %v168_v29 = vpop.f32.mrf.mxu2 }
  0xb1   :  { %v229_v36 = vmul.f32 %v220_v27, %v168_v29 }
  0xb2   :  { %v217_v31 = vpop.f32.mrf.mxu1  ;;  %v223_v35 = vpop.f32.mrf.mxu3 }
  0xb3   :  { %v228_v33 = vmul.f32 %v217_v31, %v165_v24 }
  0xb5   :  { %v232_v34 = vadd.f32 %v231_v32, %v228_v33 }
  0xb7   :  { %v233_v39 = vadd.f32 %v232_v34, %v229_v36 }
  0xb8   :  { %v171_v37 = vpop.f32.mrf.mxu2 }
  0xb9   :  { %v230_v38 = vmul.f32 %v223_v35, %v171_v37 }
  0xbb   :  { %v234_v40 = vadd.f32 %v233_v39, %v230_v38 }
  0xbd   :  { %v235_v41 = vrot.slane %v234_v40, 4 }
  0xbf   :  { %v236_v42 = vadd.f32 %v235_v41, %v234_v40 }
  0xc1   :  { %v237_v43 = vrot.slane %v236_v42, 2 }
  0xc3   :  { %v238_v44 = vadd.f32 %v237_v43, %v236_v42 }
  0xc5   :  { %v239_v45 = vrot.slane %v238_v44, 1 }
  0xc7   :  { %v240_v46 = vadd.f32 %v239_v45, %v238_v44 }
  0xc9   :  { %241 = vst [vmem:[#allocation8] sm:$0x1] %v240_v46 }
  0xca   :  { %252 = dma.vmem_to_hbm [thread:$0]  %s248_s2, 16, %s250_s30, [#allocation4]  }
  0xcb   :  { %427 = dma.done.wait [#allocation4], 16  }
  0xcc   :  { %428 = vsyncadd [#allocation4], 4294967280 }
  0xcd   :  { %257 = vsyncpa [#allocation3], 1 }
  0xce   :  { %258 = vsyncpa [#allocation6], 1 }
  0xcf   :  { %259 = vsyncpa [#allocation4], 1 }

</bundles_post_ra>
